<compile_context>
chip_gen: v7x
topology: tpu7x:2x2x1
jax: 0.10.0
libtpu: 0.0.40
codegen_flags: <defaults>
</compile_context>

<pallas_src>
import jax
import jax.numpy as jnp
from jax import lax
from jax.experimental import pallas as pl
from jax.experimental.pallas import tpu as pltpu

# psi / rho / alpha are imported-but-undefined in the reference file; we use the
# standard Huber definitions (tuning constant c = 1.345, consistency alpha).
HUBER_C = 1.345
HUBER_ALPHA = 0.7102

GAMMA = 2.0
MAXITER = 1500
EPS = 1e-5
CHECK_EVERY = 10  # amortize the convergence check over this many IRLS steps
assert MAXITER % CHECK_EVERY == 0  # preserves the exact 1500-iteration cap


def _hubreg_kernel(b_ref, xt_ref, xpc_ref, scale2_ref, beta_ref):
    P, N = xt_ref.shape

    b_row = b_ref[...]          # (1, N)   observations, lane-major
    XT = xt_ref[...]            # (P, N)   X^T
    Xpc = xpc_ref[...]          # (P, N)   Conv1d(k=1) applied to pinv(X) (hoisted)
    scale2_0 = scale2_ref[...]  # (1, 1)   initial robust scale, squared (hoisted)

    coef = GAMMA / (2.0 * HUBER_ALPHA * float(N - P - 1))  # reference uses N-p-1
    half_c2 = 0.5 * HUBER_C * HUBER_C
    c2 = HUBER_C * HUBER_C
    eps2 = EPS * EPS

    def irls_step(beta, scale2):
        # r = b - X @ beta : broadcast-multiply + sublane reduce (no MXU).
        r_row = b_row - jnp.sum(XT * beta, axis=0, keepdims=True)           # (1, N)
        # s^2*(psi(u)*u - rho(u)), u = r/s  ==  min(0.5*r^2, 0.5*c^2*s^2):
        # scale^2 folded into the threshold -> no divide on the serial chain.
        r_chi_s2 = jnp.minimum(0.5 * (r_row * r_row), half_c2 * scale2)     # (1, N)
        # scale_new^2 = coef * s^2 * sum(r_chi) == coef * sum(r_chi_s2)
        scale2_new = coef * jnp.sum(r_chi_s2, axis=-1, keepdims=True)       # (1, 1)
        # psi(r/s_new)*s_new == clip(r, -c*s_new, c*s_new); one sqrt per step
        # (the only EUP op on the chain).
        lim = jnp.sqrt(c2 * scale2_new)                                     # (1, 1)
        r_pseu = jnp.minimum(jnp.maximum(r_row, -lim), lim)                 # (1, N)
        # delta = X_plus_conv @ r_pseu : broadcast-multiply + lane reduce.
        delta = jnp.sum(Xpc * r_pseu, axis=-1, keepdims=True)               # (P, 1)
        return beta + delta, scale2_new, delta

    def cond(carry):
        i, done, _, _ = carry
        return jnp.logical_and(i < MAXITER // CHECK_EVERY, done < 0.5)

    def body(carry):
        i, _, beta, scale2 = carry
        # CHECK_EVERY-1 unchecked IRLS steps, unrolled at trace time: one big
        # basic block, no per-step vreg->sreg sync / scalar compare / branch.
        for _ in range(CHECK_EVERY - 1):
            beta, scale2, _ = irls_step(beta, scale2)
        # Final step of the block also evaluates the stopping criterion
        # crit = ||delta|| / ||beta_old|| < eps, on squared norms (no sqrt /
        # divide; nb2 == 0 correctly keeps iterating).
        beta_old = beta
        beta, scale2, delta = irls_step(beta, scale2)
        nd2 = jnp.sum(delta * delta, axis=0, keepdims=True)                 # (1, 1)
        nb2 = jnp.sum(beta_old * beta_old, axis=0, keepdims=True)           # (1, 1)
        done_new = jnp.sum((nd2 < eps2 * nb2).astype(jnp.float32))          # scalar
        return i + 1, done_new, beta, scale2

    beta0 = jnp.zeros((P, 1), jnp.float32)
    carry0 = (jnp.int32(0), jnp.float32(0.0), beta0, scale2_0)
    _, _, beta_f, _ = lax.while_loop(cond, body, carry0)
    beta_ref[...] = beta_f


def joint_regression_scale(b, X, conv_weight, conv_bias):
    """Pallas equivalent of JointRegressionScale.forward(b, X) with scale=None,
    initial_guess=None.  Returns beta of shape (P, 1)."""
    N, P = X.shape
    Xf = X.astype(jnp.float32)
    bf = b.astype(jnp.float32).reshape(N)

    # TODO(synk): torch.pinverse (SVD) has no Pallas equivalent; computed in plain JAX.
    X_plus = jnp.linalg.pinv(Xf)                                   # (P, N)

    # Conv1d(in=P, out=P, kernel_size=1) on X_plus is loop-invariant:
    # hoist it out of the kernel.  Xpc = W @ X_plus + bias.
    W = conv_weight.astype(jnp.float32).reshape(P, P)
    bias = conv_bias.astype(jnp.float32).reshape(P, 1)
    Xpc = W @ X_plus + bias                                        # (P, N)

    # initial_guess = None  ->  beta0 = 0  ->  r0 = b, so
    #   scale0 = 1.4815 * median(|b - median(b)|)
    # torch.median returns the LOWER middle element: index (N-1)//2 of the sort.
    k = (N - 1) // 2
    med = jnp.sort(bf)[k]
    mad = jnp.sort(jnp.abs(bf - med))[k]
    # Floor the degenerate MAD == 0 case at 1e-12 so scale^2 (carried in the
    # kernel) stays f32-normal (no subnormal flush-to-zero on TPU).
    scale0 = jnp.maximum(1.4815 * mad, 1e-12)
    scale2_0 = (scale0 * scale0).reshape(1, 1)                     # (1, 1)

    vmem = pl.BlockSpec(memory_space=pltpu.MemorySpace.VMEM)
    beta = pl.pallas_call(
        _hubreg_kernel,
        out_shape=jax.ShapeDtypeStruct((P, 1), jnp.float32),
        in_specs=[vmem, vmem, vmem, vmem],
        out_specs=vmem,
    )(bf.reshape(1, N), Xf.T, Xpc, scale2_0)
    return beta


if __name__ == "__main__":
    key = jax.random.PRNGKey(0)
    N, P = 64, 8  # input_size == P == X.shape[1]
    k1, k2, k3, k4, k5 = jax.random.split(key, 5)

    X = jax.random.normal(k1, (N, P), jnp.float32)
    beta_true = jax.random.normal(k2, (P, 1), jnp.float32)
    b = X @ beta_true + 0.1 * jax.random.normal(k3, (N, 1), jnp.float32)

    # Conv1d(P, P, kernel_size=1) parameters, deterministic init
    # (near-identity weight so the robust IRLS iteration converges).
    conv_weight = (jnp.eye(P, dtype=jnp.float32)
                   + 0.01 * jax.random.normal(k4, (P, P), jnp.float32)).reshape(P, P, 1)
    conv_bias = 0.001 * jax.random.normal(k5, (P,), jnp.float32)

    beta = joint_regression_scale(b, X, conv_weight, conv_bias)
    jax.block_until_ready(beta)
    print("KERNEL_OK")
</pallas_src>

<mosaic_0001>
module attributes {stable_mosaic.version = 11 : i64} {
  func.func @_hubreg_kernel(%arg0: memref<1x64xf32, #tpu.memory_space<vmem>>, %arg1: memref<8x64xf32, #tpu.memory_space<vmem>>, %arg2: memref<8x64xf32, #tpu.memory_space<vmem>>, %arg3: memref<1x1xf32, #tpu.memory_space<vmem>>, %arg4: memref<8x1xf32, #tpu.memory_space<vmem>>) attributes {dimension_semantics = [], scalar_prefetch = 0 : i64, scratch_operands = 0 : i64, tpu.core_type = #tpu.core_type<tc>} {
    %c0 = arith.constant 0 : index
    %c0_0 = arith.constant 0 : index
    %0 = vector.load %arg0[%c0, %c0_0] : memref<1x64xf32, #tpu.memory_space<vmem>>, vector<1x64xf32>
    %c0_1 = arith.constant 0 : index
    %c0_2 = arith.constant 0 : index
    %1 = vector.load %arg1[%c0_1, %c0_2] : memref<8x64xf32, #tpu.memory_space<vmem>>, vector<8x64xf32>
    %c0_3 = arith.constant 0 : index
    %c0_4 = arith.constant 0 : index
    %2 = vector.load %arg2[%c0_3, %c0_4] : memref<8x64xf32, #tpu.memory_space<vmem>>, vector<8x64xf32>
    %c0_5 = arith.constant 0 : index
    %c0_6 = arith.constant 0 : index
    %3 = vector.load %arg3[%c0_5, %c0_6] : memref<1x1xf32, #tpu.memory_space<vmem>>, vector<1x1xf32>
    %cst = arith.constant 0.000000e+00 : f32
    %4 = vector.broadcast %cst : f32 to vector<8x1xf32>
    %c0_i32 = arith.constant 0 : i32
    %cst_7 = arith.constant 0.000000e+00 : f32
    %5:4 = scf.while (%arg5 = %c0_i32, %arg6 = %cst_7, %arg7 = %4, %arg8 = %3) : (i32, f32, vector<8x1xf32>, vector<1x1xf32>) -> (i32, f32, vector<8x1xf32>, vector<1x1xf32>) {
      %c150_i32 = arith.constant 150 : i32
      %7 = arith.cmpi slt, %arg5, %c150_i32 : i32
      %cst_10 = arith.constant 5.000000e-01 : f32
      %8 = arith.cmpf olt, %arg6, %cst_10 : f32
      %9 = arith.andi %7, %8 : i1
      scf.condition(%9) %arg5, %arg6, %arg7, %arg8 : i32, f32, vector<8x1xf32>, vector<1x1xf32>
    } do {
    ^bb0(%arg5: i32, %arg6: f32, %arg7: vector<8x1xf32>, %arg8: vector<1x1xf32>):
      %7 = vector.broadcast %arg7 : vector<8x1xf32> to vector<8x64xf32>
      %8 = arith.mulf %1, %7 : vector<8x64xf32>
      %cst_10 = arith.constant dense<0.000000e+00> : vector<64xf32>
      %9 = vector.multi_reduction <add>, %8, %cst_10 [0] : vector<8x64xf32> to vector<64xf32>
      %10 = vector.shape_cast %9 : vector<64xf32> to vector<1x64xf32>
      %11 = arith.subf %0, %10 : vector<1x64xf32>
      %12 = arith.mulf %11, %11 : vector<1x64xf32>
      %cst_11 = arith.constant 5.000000e-01 : f32
      %13 = vector.broadcast %cst_11 : f32 to vector<1x64xf32>
      %14 = arith.mulf %13, %12 : vector<1x64xf32>
      %cst_12 = arith.constant 0.904512524 : f32
      %15 = vector.broadcast %cst_12 : f32 to vector<1x1xf32>
      %16 = arith.mulf %15, %arg8 : vector<1x1xf32>
      %17 = vector.broadcast %16 : vector<1x1xf32> to vector<1x64xf32>
      %18 = arith.minimumf %14, %17 : vector<1x64xf32>
      %cst_13 = arith.constant dense<0.000000e+00> : vector<1xf32>
      %19 = vector.multi_reduction <add>, %18, %cst_13 [1] : vector<1x64xf32> to vector<1xf32>
      %20 = vector.shape_cast %19 : vector<1xf32> to vector<1x1xf32>
      %cst_14 = arith.constant 0.0256009828 : f32
      %21 = vector.broadcast %cst_14 : f32 to vector<1x1xf32>
      %22 = arith.mulf %21, %20 : vector<1x1xf32>
      %cst_15 = arith.constant 1.80902505 : f32
      %23 = vector.broadcast %cst_15 : f32 to vector<1x1xf32>
      %24 = arith.mulf %23, %22 : vector<1x1xf32>
      %25 = math.sqrt %24 : vector<1x1xf32>
      %cst_16 = arith.constant 0.000000e+00 : f32
      %26 = vector.broadcast %cst_16 : f32 to vector<1x1xf32>
      %27 = arith.subf %26, %25 : vector<1x1xf32>
      %28 = vector.broadcast %27 : vector<1x1xf32> to vector<1x64xf32>
      %29 = arith.maximumf %11, %28 : vector<1x64xf32>
      %30 = vector.broadcast %25 : vector<1x1xf32> to vector<1x64xf32>
      %31 = arith.minimumf %29, %30 : vector<1x64xf32>
      %32 = vector.broadcast %31 : vector<1x64xf32> to vector<8x64xf32>
      %33 = arith.mulf %2, %32 : vector<8x64xf32>
      %cst_17 = arith.constant dense<0.000000e+00> : vector<8xf32>
      %34 = vector.multi_reduction <add>, %33, %cst_17 [1] : vector<8x64xf32> to vector<8xf32>
      %35 = vector.shape_cast %34 : vector<8xf32> to vector<8x1xf32>
      %36 = arith.addf %arg7, %35 : vector<8x1xf32>
      %37 = vector.broadcast %36 : vector<8x1xf32> to vector<8x64xf32>
      %38 = arith.mulf %1, %37 : vector<8x64xf32>
      %cst_18 = arith.constant dense<0.000000e+00> : vector<64xf32>
      %39 = vector.multi_reduction <add>, %38, %cst_18 [0] : vector<8x64xf32> to vector<64xf32>
      %40 = vector.shape_cast %39 : vector<64xf32> to vector<1x64xf32>
      %41 = arith.subf %0, %40 : vector<1x64xf32>
      %42 = arith.mulf %41, %41 : vector<1x64xf32>
      %cst_19 = arith.constant 5.000000e-01 : f32
      %43 = vector.broadcast %cst_19 : f32 to vector<1x64xf32>
      %44 = arith.mulf %43, %42 : vector<1x64xf32>
      %cst_20 = arith.constant 0.904512524 : f32
      %45 = vector.broadcast %cst_20 : f32 to vector<1x1xf32>
      %46 = arith.mulf %45, %22 : vector<1x1xf32>
      %47 = vector.broadcast %46 : vector<1x1xf32> to vector<1x64xf32>
      %48 = arith.minimumf %44, %47 : vector<1x64xf32>
      %cst_21 = arith.constant dense<0.000000e+00> : vector<1xf32>
      %49 = vector.multi_reduction <add>, %48, %cst_21 [1] : vector<1x64xf32> to vector<1xf32>
      %50 = vector.shape_cast %49 : vector<1xf32> to vector<1x1xf32>
      %cst_22 = arith.constant 0.0256009828 : f32
      %51 = vector.broadcast %cst_22 : f32 to vector<1x1xf32>
      %52 = arith.mulf %51, %50 : vector<1x1xf32>
      %cst_23 = arith.constant 1.80902505 : f32
      %53 = vector.broadcast %cst_23 : f32 to vector<1x1xf32>
      %54 = arith.mulf %53, %52 : vector<1x1xf32>
      %55 = math.sqrt %54 : vector<1x1xf32>
      %cst_24 = arith.constant 0.000000e+00 : f32
      %56 = vector.broadcast %cst_24 : f32 to vector<1x1xf32>
      %57 = arith.subf %56, %55 : vector<1x1xf32>
      %58 = vector.broadcast %57 : vector<1x1xf32> to vector<1x64xf32>
      %59 = arith.maximumf %41, %58 : vector<1x64xf32>
      %60 = vector.broadcast %55 : vector<1x1xf32> to vector<1x64xf32>
      %61 = arith.minimumf %59, %60 : vector<1x64xf32>
      %62 = vector.broadcast %61 : vector<1x64xf32> to vector<8x64xf32>
      %63 = arith.mulf %2, %62 : vector<8x64xf32>
      %cst_25 = arith.constant dense<0.000000e+00> : vector<8xf32>
      %64 = vector.multi_reduction <add>, %63, %cst_25 [1] : vector<8x64xf32> to vector<8xf32>
      %65 = vector.shape_cast %64 : vector<8xf32> to vector<8x1xf32>
      %66 = arith.addf %36, %65 : vector<8x1xf32>
      %67 = vector.broadcast %66 : vector<8x1xf32> to vector<8x64xf32>
      %68 = arith.mulf %1, %67 : vector<8x64xf32>
      %cst_26 = arith.constant dense<0.000000e+00> : vector<64xf32>
      %69 = vector.multi_reduction <add>, %68, %cst_26 [0] : vector<8x64xf32> to vector<64xf32>
      %70 = vector.shape_cast %69 : vector<64xf32> to vector<1x64xf32>
      %71 = arith.subf %0, %70 : vector<1x64xf32>
      %72 = arith.mulf %71, %71 : vector<1x64xf32>
      %cst_27 = arith.constant 5.000000e-01 : f32
      %73 = vector.broadcast %cst_27 : f32 to vector<1x64xf32>
      %74 = arith.mulf %73, %72 : vector<1x64xf32>
      %cst_28 = arith.constant 0.904512524 : f32
      %75 = vector.broadcast %cst_28 : f32 to vector<1x1xf32>
      %76 = arith.mulf %75, %52 : vector<1x1xf32>
      %77 = vector.broadcast %76 : vector<1x1xf32> to vector<1x64xf32>
      %78 = arith.minimumf %74, %77 : vector<1x64xf32>
      %cst_29 = arith.constant dense<0.000000e+00> : vector<1xf32>
      %79 = vector.multi_reduction <add>, %78, %cst_29 [1] : vector<1x64xf32> to vector<1xf32>
      %80 = vector.shape_cast %79 : vector<1xf32> to vector<1x1xf32>
      %cst_30 = arith.constant 0.0256009828 : f32
      %81 = vector.broadcast %cst_30 : f32 to vector<1x1xf32>
      %82 = arith.mulf %81, %80 : vector<1x1xf32>
      %cst_31 = arith.constant 1.80902505 : f32
      %83 = vector.broadcast %cst_31 : f32 to vector<1x1xf32>
      %84 = arith.mulf %83, %82 : vector<1x1xf32>
      %85 = math.sqrt %84 : vector<1x1xf32>
      %cst_32 = arith.constant 0.000000e+00 : f32
      %86 = vector.broadcast %cst_32 : f32 to vector<1x1xf32>
      %87 = arith.subf %86, %85 : vector<1x1xf32>
      %88 = vector.broadcast %87 : vector<1x1xf32> to vector<1x64xf32>
      %89 = arith.maximumf %71, %88 : vector<1x64xf32>
      %90 = vector.broadcast %85 : vector<1x1xf32> to vector<1x64xf32>
      %91 = arith.minimumf %89, %90 : vector<1x64xf32>
      %92 = vector.broadcast %91 : vector<1x64xf32> to vector<8x64xf32>
      %93 = arith.mulf %2, %92 : vector<8x64xf32>
      %cst_33 = arith.constant dense<0.000000e+00> : vector<8xf32>
      %94 = vector.multi_reduction <add>, %93, %cst_33 [1] : vector<8x64xf32> to vector<8xf32>
      %95 = vector.shape_cast %94 : vector<8xf32> to vector<8x1xf32>
      %96 = arith.addf %66, %95 : vector<8x1xf32>
      %97 = vector.broadcast %96 : vector<8x1xf32> to vector<8x64xf32>
      %98 = arith.mulf %1, %97 : vector<8x64xf32>
      %cst_34 = arith.constant dense<0.000000e+00> : vector<64xf32>
      %99 = vector.multi_reduction <add>, %98, %cst_34 [0] : vector<8x64xf32> to vector<64xf32>
      %100 = vector.shape_cast %99 : vector<64xf32> to vector<1x64xf32>
      %101 = arith.subf %0, %100 : vector<1x64xf32>
      %102 = arith.mulf %101, %101 : vector<1x64xf32>
      %cst_35 = arith.constant 5.000000e-01 : f32
      %103 = vector.broadcast %cst_35 : f32 to vector<1x64xf32>
      %104 = arith.mulf %103, %102 : vector<1x64xf32>
      %cst_36 = arith.constant 0.904512524 : f32
      %105 = vector.broadcast %cst_36 : f32 to vector<1x1xf32>
      %106 = arith.mulf %105, %82 : vector<1x1xf32>
      %107 = vector.broadcast %106 : vector<1x1xf32> to vector<1x64xf32>
      %108 = arith.minimumf %104, %107 : vector<1x64xf32>
      %cst_37 = arith.constant dense<0.000000e+00> : vector<1xf32>
      %109 = vector.multi_reduction <add>, %108, %cst_37 [1] : vector<1x64xf32> to vector<1xf32>
      %110 = vector.shape_cast %109 : vector<1xf32> to vector<1x1xf32>
      %cst_38 = arith.constant 0.0256009828 : f32
      %111 = vector.broadcast %cst_38 : f32 to vector<1x1xf32>
      %112 = arith.mulf %111, %110 : vector<1x1xf32>
      %cst_39 = arith.constant 1.80902505 : f32
      %113 = vector.broadcast %cst_39 : f32 to vector<1x1xf32>
      %114 = arith.mulf %113, %112 : vector<1x1xf32>
      %115 = math.sqrt %114 : vector<1x1xf32>
      %cst_40 = arith.constant 0.000000e+00 : f32
      %116 = vector.broadcast %cst_40 : f32 to vector<1x1xf32>
      %117 = arith.subf %116, %115 : vector<1x1xf32>
      %118 = vector.broadcast %117 : vector<1x1xf32> to vector<1x64xf32>
      %119 = arith.maximumf %101, %118 : vector<1x64xf32>
      %120 = vector.broadcast %115 : vector<1x1xf32> to vector<1x64xf32>
      %121 = arith.minimumf %119, %120 : vector<1x64xf32>
      %122 = vector.broadcast %121 : vector<1x64xf32> to vector<8x64xf32>
      %123 = arith.mulf %2, %122 : vector<8x64xf32>
      %cst_41 = arith.constant dense<0.000000e+00> : vector<8xf32>
      %124 = vector.multi_reduction <add>, %123, %cst_41 [1] : vector<8x64xf32> to vector<8xf32>
      %125 = vector.shape_cast %124 : vector<8xf32> to vector<8x1xf32>
      %126 = arith.addf %96, %125 : vector<8x1xf32>
      %127 = vector.broadcast %126 : vector<8x1xf32> to vector<8x64xf32>
      %128 = arith.mulf %1, %127 : vector<8x64xf32>
      %cst_42 = arith.constant dense<0.000000e+00> : vector<64xf32>
      %129 = vector.multi_reduction <add>, %128, %cst_42 [0] : vector<8x64xf32> to vector<64xf32>
      %130 = vector.shape_cast %129 : vector<64xf32> to vector<1x64xf32>
      %131 = arith.subf %0, %130 : vector<1x64xf32>
      %132 = arith.mulf %131, %131 : vector<1x64xf32>
      %cst_43 = arith.constant 5.000000e-01 : f32
      %133 = vector.broadcast %cst_43 : f32 to vector<1x64xf32>
      %134 = arith.mulf %133, %132 : vector<1x64xf32>
      %cst_44 = arith.constant 0.904512524 : f32
      %135 = vector.broadcast %cst_44 : f32 to vector<1x1xf32>
      %136 = arith.mulf %135, %112 : vector<1x1xf32>
      %137 = vector.broadcast %136 : vector<1x1xf32> to vector<1x64xf32>
      %138 = arith.minimumf %134, %137 : vector<1x64xf32>
      %cst_45 = arith.constant dense<0.000000e+00> : vector<1xf32>
      %139 = vector.multi_reduction <add>, %138, %cst_45 [1] : vector<1x64xf32> to vector<1xf32>
      %140 = vector.shape_cast %139 : vector<1xf32> to vector<1x1xf32>
      %cst_46 = arith.constant 0.0256009828 : f32
      %141 = vector.broadcast %cst_46 : f32 to vector<1x1xf32>
      %142 = arith.mulf %141, %140 : vector<1x1xf32>
      %cst_47 = arith.constant 1.80902505 : f32
      %143 = vector.broadcast %cst_47 : f32 to vector<1x1xf32>
      %144 = arith.mulf %143, %142 : vector<1x1xf32>
      %145 = math.sqrt %144 : vector<1x1xf32>
      %cst_48 = arith.constant 0.000000e+00 : f32
      %146 = vector.broadcast %cst_48 : f32 to vector<1x1xf32>
      %147 = arith.subf %146, %145 : vector<1x1xf32>
      %148 = vector.broadcast %147 : vector<1x1xf32> to vector<1x64xf32>
      %149 = arith.maximumf %131, %148 : vector<1x64xf32>
      %150 = vector.broadcast %145 : vector<1x1xf32> to vector<1x64xf32>
      %151 = arith.minimumf %149, %150 : vector<1x64xf32>
      %152 = vector.broadcast %151 : vector<1x64xf32> to vector<8x64xf32>
      %153 = arith.mulf %2, %152 : vector<8x64xf32>
      %cst_49 = arith.constant dense<0.000000e+00> : vector<8xf32>
      %154 = vector.multi_reduction <add>, %153, %cst_49 [1] : vector<8x64xf32> to vector<8xf32>
      %155 = vector.shape_cast %154 : vector<8xf32> to vector<8x1xf32>
      %156 = arith.addf %126, %155 : vector<8x1xf32>
      %157 = vector.broadcast %156 : vector<8x1xf32> to vector<8x64xf32>
      %158 = arith.mulf %1, %157 : vector<8x64xf32>
      %cst_50 = arith.constant dense<0.000000e+00> : vector<64xf32>
      %159 = vector.multi_reduction <add>, %158, %cst_50 [0] : vector<8x64xf32> to vector<64xf32>
      %160 = vector.shape_cast %159 : vector<64xf32> to vector<1x64xf32>
      %161 = arith.subf %0, %160 : vector<1x64xf32>
      %162 = arith.mulf %161, %161 : vector<1x64xf32>
      %cst_51 = arith.constant 5.000000e-01 : f32
      %163 = vector.broadcast %cst_51 : f32 to vector<1x64xf32>
      %164 = arith.mulf %163, %162 : vector<1x64xf32>
      %cst_52 = arith.constant 0.904512524 : f32
      %165 = vector.broadcast %cst_52 : f32 to vector<1x1xf32>
      %166 = arith.mulf %165, %142 : vector<1x1xf32>
      %167 = vector.broadcast %166 : vector<1x1xf32> to vector<1x64xf32>
      %168 = arith.minimumf %164, %167 : vector<1x64xf32>
      %cst_53 = arith.constant dense<0.000000e+00> : vector<1xf32>
      %169 = vector.multi_reduction <add>, %168, %cst_53 [1] : vector<1x64xf32> to vector<1xf32>
      %170 = vector.shape_cast %169 : vector<1xf32> to vector<1x1xf32>
      %cst_54 = arith.constant 0.0256009828 : f32
      %171 = vector.broadcast %cst_54 : f32 to vector<1x1xf32>
      %172 = arith.mulf %171, %170 : vector<1x1xf32>
      %cst_55 = arith.constant 1.80902505 : f32
      %173 = vector.broadcast %cst_55 : f32 to vector<1x1xf32>
      %174 = arith.mulf %173, %172 : vector<1x1xf32>
      %175 = math.sqrt %174 : vector<1x1xf32>
      %cst_56 = arith.constant 0.000000e+00 : f32
      %176 = vector.broadcast %cst_56 : f32 to vector<1x1xf32>
      %177 = arith.subf %176, %175 : vector<1x1xf32>
      %178 = vector.broadcast %177 : vector<1x1xf32> to vector<1x64xf32>
      %179 = arith.maximumf %161, %178 : vector<1x64xf32>
      %180 = vector.broadcast %175 : vector<1x1xf32> to vector<1x64xf32>
      %181 = arith.minimumf %179, %180 : vector<1x64xf32>
      %182 = vector.broadcast %181 : vector<1x64xf32> to vector<8x64xf32>
      %183 = arith.mulf %2, %182 : vector<8x64xf32>
      %cst_57 = arith.constant dense<0.000000e+00> : vector<8xf32>
      %184 = vector.multi_reduction <add>, %183, %cst_57 [1] : vector<8x64xf32> to vector<8xf32>
      %185 = vector.shape_cast %184 : vector<8xf32> to vector<8x1xf32>
      %186 = arith.addf %156, %185 : vector<8x1xf32>
      %187 = vector.broadcast %186 : vector<8x1xf32> to vector<8x64xf32>
      %188 = arith.mulf %1, %187 : vector<8x64xf32>
      %cst_58 = arith.constant dense<0.000000e+00> : vector<64xf32>
      %189 = vector.multi_reduction <add>, %188, %cst_58 [0] : vector<8x64xf32> to vector<64xf32>
      %190 = vector.shape_cast %189 : vector<64xf32> to vector<1x64xf32>
      %191 = arith.subf %0, %190 : vector<1x64xf32>
      %192 = arith.mulf %191, %191 : vector<1x64xf32>
      %cst_59 = arith.constant 5.000000e-01 : f32
      %193 = vector.broadcast %cst_59 : f32 to vector<1x64xf32>
      %194 = arith.mulf %193, %192 : vector<1x64xf32>
      %cst_60 = arith.constant 0.904512524 : f32
      %195 = vector.broadcast %cst_60 : f32 to vector<1x1xf32>
      %196 = arith.mulf %195, %172 : vector<1x1xf32>
      %197 = vector.broadcast %196 : vector<1x1xf32> to vector<1x64xf32>
      %198 = arith.minimumf %194, %197 : vector<1x64xf32>
      %cst_61 = arith.constant dense<0.000000e+00> : vector<1xf32>
      %199 = vector.multi_reduction <add>, %198, %cst_61 [1] : vector<1x64xf32> to vector<1xf32>
      %200 = vector.shape_cast %199 : vector<1xf32> to vector<1x1xf32>
      %cst_62 = arith.constant 0.0256009828 : f32
      %201 = vector.broadcast %cst_62 : f32 to vector<1x1xf32>
      %202 = arith.mulf %201, %200 : vector<1x1xf32>
      %cst_63 = arith.constant 1.80902505 : f32
      %203 = vector.broadcast %cst_63 : f32 to vector<1x1xf32>
      %204 = arith.mulf %203, %202 : vector<1x1xf32>
      %205 = math.sqrt %204 : vector<1x1xf32>
      %cst_64 = arith.constant 0.000000e+00 : f32
      %206 = vector.broadcast %cst_64 : f32 to vector<1x1xf32>
      %207 = arith.subf %206, %205 : vector<1x1xf32>
      %208 = vector.broadcast %207 : vector<1x1xf32> to vector<1x64xf32>
      %209 = arith.maximumf %191, %208 : vector<1x64xf32>
      %210 = vector.broadcast %205 : vector<1x1xf32> to vector<1x64xf32>
      %211 = arith.minimumf %209, %210 : vector<1x64xf32>
      %212 = vector.broadcast %211 : vector<1x64xf32> to vector<8x64xf32>
      %213 = arith.mulf %2, %212 : vector<8x64xf32>
      %cst_65 = arith.constant dense<0.000000e+00> : vector<8xf32>
      %214 = vector.multi_reduction <add>, %213, %cst_65 [1] : vector<8x64xf32> to vector<8xf32>
      %215 = vector.shape_cast %214 : vector<8xf32> to vector<8x1xf32>
      %216 = arith.addf %186, %215 : vector<8x1xf32>
      %217 = vector.broadcast %216 : vector<8x1xf32> to vector<8x64xf32>
      %218 = arith.mulf %1, %217 : vector<8x64xf32>
      %cst_66 = arith.constant dense<0.000000e+00> : vector<64xf32>
      %219 = vector.multi_reduction <add>, %218, %cst_66 [0] : vector<8x64xf32> to vector<64xf32>
      %220 = vector.shape_cast %219 : vector<64xf32> to vector<1x64xf32>
      %221 = arith.subf %0, %220 : vector<1x64xf32>
      %222 = arith.mulf %221, %221 : vector<1x64xf32>
      %cst_67 = arith.constant 5.000000e-01 : f32
      %223 = vector.broadcast %cst_67 : f32 to vector<1x64xf32>
      %224 = arith.mulf %223, %222 : vector<1x64xf32>
      %cst_68 = arith.constant 0.904512524 : f32
      %225 = vector.broadcast %cst_68 : f32 to vector<1x1xf32>
      %226 = arith.mulf %225, %202 : vector<1x1xf32>
      %227 = vector.broadcast %226 : vector<1x1xf32> to vector<1x64xf32>
      %228 = arith.minimumf %224, %227 : vector<1x64xf32>
      %cst_69 = arith.constant dense<0.000000e+00> : vector<1xf32>
      %229 = vector.multi_reduction <add>, %228, %cst_69 [1] : vector<1x64xf32> to vector<1xf32>
      %230 = vector.shape_cast %229 : vector<1xf32> to vector<1x1xf32>
      %cst_70 = arith.constant 0.0256009828 : f32
      %231 = vector.broadcast %cst_70 : f32 to vector<1x1xf32>
      %232 = arith.mulf %231, %230 : vector<1x1xf32>
      %cst_71 = arith.constant 1.80902505 : f32
      %233 = vector.broadcast %cst_71 : f32 to vector<1x1xf32>
      %234 = arith.mulf %233, %232 : vector<1x1xf32>
      %235 = math.sqrt %234 : vector<1x1xf32>
      %cst_72 = arith.constant 0.000000e+00 : f32
      %236 = vector.broadcast %cst_72 : f32 to vector<1x1xf32>
      %237 = arith.subf %236, %235 : vector<1x1xf32>
      %238 = vector.broadcast %237 : vector<1x1xf32> to vector<1x64xf32>
      %239 = arith.maximumf %221, %238 : vector<1x64xf32>
      %240 = vector.broadcast %235 : vector<1x1xf32> to vector<1x64xf32>
      %241 = arith.minimumf %239, %240 : vector<1x64xf32>
      %242 = vector.broadcast %241 : vector<1x64xf32> to vector<8x64xf32>
      %243 = arith.mulf %2, %242 : vector<8x64xf32>
      %cst_73 = arith.constant dense<0.000000e+00> : vector<8xf32>
      %244 = vector.multi_reduction <add>, %243, %cst_73 [1] : vector<8x64xf32> to vector<8xf32>
      %245 = vector.shape_cast %244 : vector<8xf32> to vector<8x1xf32>
      %246 = arith.addf %216, %245 : vector<8x1xf32>
      %247 = vector.broadcast %246 : vector<8x1xf32> to vector<8x64xf32>
      %248 = arith.mulf %1, %247 : vector<8x64xf32>
      %cst_74 = arith.constant dense<0.000000e+00> : vector<64xf32>
      %249 = vector.multi_reduction <add>, %248, %cst_74 [0] : vector<8x64xf32> to vector<64xf32>
      %250 = vector.shape_cast %249 : vector<64xf32> to vector<1x64xf32>
      %251 = arith.subf %0, %250 : vector<1x64xf32>
      %252 = arith.mulf %251, %251 : vector<1x64xf32>
      %cst_75 = arith.constant 5.000000e-01 : f32
      %253 = vector.broadcast %cst_75 : f32 to vector<1x64xf32>
      %254 = arith.mulf %253, %252 : vector<1x64xf32>
      %cst_76 = arith.constant 0.904512524 : f32
      %255 = vector.broadcast %cst_76 : f32 to vector<1x1xf32>
      %256 = arith.mulf %255, %232 : vector<1x1xf32>
      %257 = vector.broadcast %256 : vector<1x1xf32> to vector<1x64xf32>
      %258 = arith.minimumf %254, %257 : vector<1x64xf32>
      %cst_77 = arith.constant dense<0.000000e+00> : vector<1xf32>
      %259 = vector.multi_reduction <add>, %258, %cst_77 [1] : vector<1x64xf32> to vector<1xf32>
      %260 = vector.shape_cast %259 : vector<1xf32> to vector<1x1xf32>
      %cst_78 = arith.constant 0.0256009828 : f32
      %261 = vector.broadcast %cst_78 : f32 to vector<1x1xf32>
      %262 = arith.mulf %261, %260 : vector<1x1xf32>
      %cst_79 = arith.constant 1.80902505 : f32
      %263 = vector.broadcast %cst_79 : f32 to vector<1x1xf32>
      %264 = arith.mulf %263, %262 : vector<1x1xf32>
      %265 = math.sqrt %264 : vector<1x1xf32>
      %cst_80 = arith.constant 0.000000e+00 : f32
      %266 = vector.broadcast %cst_80 : f32 to vector<1x1xf32>
      %267 = arith.subf %266, %265 : vector<1x1xf32>
      %268 = vector.broadcast %267 : vector<1x1xf32> to vector<1x64xf32>
      %269 = arith.maximumf %251, %268 : vector<1x64xf32>
      %270 = vector.broadcast %265 : vector<1x1xf32> to vector<1x64xf32>
      %271 = arith.minimumf %269, %270 : vector<1x64xf32>
      %272 = vector.broadcast %271 : vector<1x64xf32> to vector<8x64xf32>
      %273 = arith.mulf %2, %272 : vector<8x64xf32>
      %cst_81 = arith.constant dense<0.000000e+00> : vector<8xf32>
      %274 = vector.multi_reduction <add>, %273, %cst_81 [1] : vector<8x64xf32> to vector<8xf32>
      %275 = vector.shape_cast %274 : vector<8xf32> to vector<8x1xf32>
      %276 = arith.addf %246, %275 : vector<8x1xf32>
      %277 = vector.broadcast %276 : vector<8x1xf32> to vector<8x64xf32>
      %278 = arith.mulf %1, %277 : vector<8x64xf32>
      %cst_82 = arith.constant dense<0.000000e+00> : vector<64xf32>
      %279 = vector.multi_reduction <add>, %278, %cst_82 [0] : vector<8x64xf32> to vector<64xf32>
      %280 = vector.shape_cast %279 : vector<64xf32> to vector<1x64xf32>
      %281 = arith.subf %0, %280 : vector<1x64xf32>
      %282 = arith.mulf %281, %281 : vector<1x64xf32>
      %cst_83 = arith.constant 5.000000e-01 : f32
      %283 = vector.broadcast %cst_83 : f32 to vector<1x64xf32>
      %284 = arith.mulf %283, %282 : vector<1x64xf32>
      %cst_84 = arith.constant 0.904512524 : f32
      %285 = vector.broadcast %cst_84 : f32 to vector<1x1xf32>
      %286 = arith.mulf %285, %262 : vector<1x1xf32>
      %287 = vector.broadcast %286 : vector<1x1xf32> to vector<1x64xf32>
      %288 = arith.minimumf %284, %287 : vector<1x64xf32>
      %cst_85 = arith.constant dense<0.000000e+00> : vector<1xf32>
      %289 = vector.multi_reduction <add>, %288, %cst_85 [1] : vector<1x64xf32> to vector<1xf32>
      %290 = vector.shape_cast %289 : vector<1xf32> to vector<1x1xf32>
      %cst_86 = arith.constant 0.0256009828 : f32
      %291 = vector.broadcast %cst_86 : f32 to vector<1x1xf32>
      %292 = arith.mulf %291, %290 : vector<1x1xf32>
      %cst_87 = arith.constant 1.80902505 : f32
      %293 = vector.broadcast %cst_87 : f32 to vector<1x1xf32>
      %294 = arith.mulf %293, %292 : vector<1x1xf32>
      %295 = math.sqrt %294 : vector<1x1xf32>
      %cst_88 = arith.constant 0.000000e+00 : f32
      %296 = vector.broadcast %cst_88 : f32 to vector<1x1xf32>
      %297 = arith.subf %296, %295 : vector<1x1xf32>
      %298 = vector.broadcast %297 : vector<1x1xf32> to vector<1x64xf32>
      %299 = arith.maximumf %281, %298 : vector<1x64xf32>
      %300 = vector.broadcast %295 : vector<1x1xf32> to vector<1x64xf32>
      %301 = arith.minimumf %299, %300 : vector<1x64xf32>
      %302 = vector.broadcast %301 : vector<1x64xf32> to vector<8x64xf32>
      %303 = arith.mulf %2, %302 : vector<8x64xf32>
      %cst_89 = arith.constant dense<0.000000e+00> : vector<8xf32>
      %304 = vector.multi_reduction <add>, %303, %cst_89 [1] : vector<8x64xf32> to vector<8xf32>
      %305 = vector.shape_cast %304 : vector<8xf32> to vector<8x1xf32>
      %306 = arith.addf %276, %305 : vector<8x1xf32>
      %307 = arith.mulf %305, %305 : vector<8x1xf32>
      %cst_90 = arith.constant dense<0.000000e+00> : vector<1xf32>
      %308 = vector.multi_reduction <add>, %307, %cst_90 [0] : vector<8x1xf32> to vector<1xf32>
      %309 = vector.shape_cast %308 : vector<1xf32> to vector<1x1xf32>
      %310 = arith.mulf %276, %276 : vector<8x1xf32>
      %cst_91 = arith.constant dense<0.000000e+00> : vector<1xf32>
      %311 = vector.multi_reduction <add>, %310, %cst_91 [0] : vector<8x1xf32> to vector<1xf32>
      %312 = vector.shape_cast %311 : vector<1xf32> to vector<1x1xf32>
      %cst_92 = arith.constant 1.000000e-10 : f32
      %313 = vector.broadcast %cst_92 : f32 to vector<1x1xf32>
      %314 = arith.mulf %313, %312 : vector<1x1xf32>
      %315 = arith.cmpf olt, %309, %314 : vector<1x1xf32>
      %316 = arith.extui %315 : vector<1x1xi1> to vector<1x1xi32>
      %317 = arith.sitofp %316 : vector<1x1xi32> to vector<1x1xf32>
      %318 = vector.shape_cast %317 : vector<1x1xf32> to vector<1x1x1xf32>
      %cst_93 = arith.constant dense<0.000000e+00> : vector<1xf32>
      %319 = vector.multi_reduction <add>, %318, %cst_93 [1, 2] : vector<1x1x1xf32> to vector<1xf32>
      %320 = vector.shape_cast %319 : vector<1xf32> to vector<1x1x1xf32>
      %321 = vector.extract %320[0, 0, 0] : f32 from vector<1x1x1xf32>
      %c1_i32 = arith.constant 1 : i32
      %322 = arith.addi %arg5, %c1_i32 : i32
      scf.yield %322, %321, %306, %292 : i32, f32, vector<8x1xf32>, vector<1x1xf32>
    }
    %c0_8 = arith.constant 0 : index
    %c0_9 = arith.constant 0 : index
    %6 = vector.load %arg4[%c0_8, %c0_9] : memref<8x1xf32, #tpu.memory_space<vmem>>, vector<8x1xf32>
    tpu.vector_store %arg4[%c0_8, %c0_9], %5#2 {strides = array<i32>} : memref<8x1xf32, #tpu.memory_space<vmem>>, vector<8x1xf32>,
    return
  }
}

</mosaic_0001>

<bundles_post_ra>
// kernel: tpu_custom_call.1
= control target key start
LH: loop header
LB: loop body
LE: loop exit
PB: predicated region body
PF: predicated region fallthrough
CT: control target
= control target key end

     0   :  { %s732_s0 = inlined_call_operand.vmem [shape: f32[1,64], index: 0, kind: input, shape index: {}]   ;;  %s733_s1 = inlined_call_operand.hbm [shape: f32[8,64], index: 1, kind: input, shape index: {}]   ;;  %s734_s2 = inlined_call_operand.vmem [shape: f32[8,64], index: 2, kind: input, shape index: {}]   ;;  %s735_s3 = inlined_call_operand.<no memory space> [shape: f32[1,1], index: 3, kind: input, shape index: {}]   ;;  %s736_s4 = inlined_call_operand.vmem [shape: f32[8,1], index: 4, kind: output, shape index: {}]  }
   0x1   :  { %v9_v0 = vstv %s735_s3 }
   0x2   :  { %10 = vst [vmem:[#allocation2] sm:$0x1] %v9_v0 }
   0x3   :  { %11 = vsyncpa [#allocation4], 0  ;;  %s584_s17 = smov [#allocation3]   ;;  %s536_s21 = scalar_lea.hbm %s733_s1, 128 }
   0x4   :  { %s20_s18 = sshll.u32 %s584_s17, 4  ;;  %p537_p0 = scmp.ne.s32.totalorder %s733_s1, %s536_s21  ;;  %s21_s18 = int_to_ptr.vmem [resolvable:$true] %s20_s18 }
   0x5   :  { %p540_p1 = scmp.lt.u32.totalorder %s536_s21, %s733_s1 }
   0x7   :  { %p542_p2 = pnand %p540_p1, %p537_p0 }
   0x9   :  { %545 = shalt.err (!%p542_p2)
}
   0xa   :  { %s546_s3 = scalar_lea.vmem %s21_s18, 128  ;;  %p551_p4 = scmp.lt.s32.totalorder %s21_s18, %s21_s18 }
   0xb   :  { %p547_p3 = scmp.ne.s32.totalorder %s21_s18, %s546_s3  ;;  %p552_p5 = scmp.lt.s32.totalorder %s546_s3, %s546_s3 }
   0xd   :  { %p553_p6 = por %p552_p5, %p551_p4 }
   0xf   :  { %p554_p7 = pnand %p553_p6, %p547_p3 }
  0x11   :  { %557 = shalt.err (!%p554_p7)
}
  0x12   :  { %23 = dma.hbm_to_vmem [thread:$0]  %s733_s1, 128, %s21_s18, [#allocation4]  }
  0x13   :  { %570 = dma.done.wait [#allocation4], 128  }
  0x14   :  { %571 = vsyncadd [#allocation4], 4294967168  ;;  %v630_v1 = vld [vmem:[%s732_s0] sm:$0x1]  ;;  %v632_v2 = vld [vmem:[#allocation3] sm:$0xff]  ;;  %v641_v5 = vmov 0.0  }
  0x15   :  { %v637_v3 = vld [vmem:[%s734_s2] sm:$0xff]  ;;  %s643_s1 = smov 0  }
  0x16   :  { %v34_v4 = vld [vmem:[#allocation2] sm:$0x1]  }
  0x17 LB: > { %v585_v6 = vmov 0   ;;  %v58_v7 = vmul.f32 0.9045125, %v574_v4  ;;  %v46_v8 = vmul.f32 %v578_v5, %v632_v2  ;;  %vm47_vm0 = vcmask 523264   ;;  %s463_s1 = sadd.s32 1, %s582_s1   ;;  %s582_s1 = sphi %s643_s1, %s463_s1   ;;  %v578_v5 = vphi %v641_v5, %v737_v5   ;;  %v574_v4 = vphi %v34_v4, %v420_v4  }
  0x18   : > { %515 = vset.pattern.permute.xlu0 %v585_v6  ;;  %vm65_vm1 = vcmask 516096   ;;  %v82_v25 = vlaneseq  ;;  %p40_p8 = scmp.lt.s32.totalorder %s463_s1, 150 }
  0x19   : > { %61 = vperm.xlu0 %515, %v58_v7   ;;  %v48_v9 = vsel %vm47_vm0, %v46_v8, 0.0 }
  0x1a   : > { %v49_v10 = vrot.slane %v48_v9, 4  ;;  %v83_v30 = vshrl.u32 %v82_v25, 7 }
  0x1c   : > { %v50_v11 = vadd.f32 %v49_v10, %v48_v9  ;;  %v654_v34 = vsub.s32 0, %v83_v30 }
  0x1e   : > { %v51_v12 = vrot.slane %v50_v11, 2 }
  0x20   : > { %v52_v13 = vadd.f32 %v51_v12, %v50_v11 }
  0x22   : > { %v53_v14 = vrot.slane %v52_v13, 1 }
  0x24   : > { %v54_v15 = vadd.f32 %v53_v14, %v52_v13 }
  0x26   : > { %v55_v16 = vsub.f32 %v630_v1, %v54_v15 }
  0x28   : > { %v56_v17 = vmul.f32 %v55_v16, %v55_v16 }
  0x2a   : > { %v57_v18 = vmul.f32 0.5, %v56_v17 }
  0x98   : > { %v62_v19 = vpop.permute.xlu0 %61 }
  0x99   : > { %v64_v20 = vmin.f32 %v57_v18, %v62_v19 }
  0x9b   : > { %v66_v21 = vsel %vm65_vm1, %v64_v20, 0.0 }
  0x9c   : > { %67 = vadd.xlane.f32.xlu0 %v66_v21 }
 0x129   : > { %v68_v22 = vpop.xlane.xlu0 %67 }
 0x12a   : > { %v69_v23 = vmul.f32 0.025600983, %v68_v22 }
 0x12c   : > { %v70_v24 = vmul.f32 1.809025, %v69_v23  ;;  %v103_v51 = vmul.f32 0.9045125, %v69_v23 }
 0x12e   : > { %516 = vrsqrt.f32 %v70_v24  ;;  %vm73_vm2 = vcmp.eq.f32.partialorder %v70_v24, inf  ;;  %v76_v28 = vand.u32 2147483648, %v70_v24  ;;  %vm75_vm3 = vcmp.eq.f32.partialorder %v70_v24, 0.0 }
 0x138   : > { %v517_v26 = vpop.eup %516 }
 0x139   : > { %v72_v27 = vmul.f32 %v517_v26, %v70_v24 }
 0x13b   : > { %v74_v29 = vsel %vm73_vm2, %v70_v24, %v72_v27 }
 0x13c   : > { %v77_v31 = vsel %vm75_vm3, %v76_v28, %v74_v29 }
 0x13d   : > { %v78_v32 = vsub.f32 0.0, %v77_v31 }
 0x13f   : > { %v79_v33 = vmax.f32 %v55_v16, %v78_v32 }
 0x141   : > { %v80_v35 = vmin.f32 %v79_v33, %v77_v31 }
 0x143   : > { %v85_v36 = vrot.slane %v80_v35, %v654_v34 }
 0x145   : > { %v87_v37 = vmul.f32 %v85_v36, %v637_v3 }
 0x147   : > { %v88_v38 = vsel %vm47_vm0, %v87_v37, 0.0 }
 0x148   : > { %89 = vadd.xlane.f32.xlu1 %v88_v38 }
 0x1d5   : > { %v90_v39 = vpop.xlane.xlu1 %89 }
 0x1d6   : > { %v91_v40 = vadd.f32 %v578_v5, %v90_v39 }
 0x1d8   : > { %v92_v41 = vmul.f32 %v91_v40, %v632_v2 }
 0x1da   : > { %v93_v42 = vsel %vm47_vm0, %v92_v41, 0.0 }
 0x1db   : > { %v94_v43 = vrot.slane %v93_v42, 4 }
 0x1dd   : > { %v95_v44 = vadd.f32 %v94_v43, %v93_v42 }
 0x1df   : > { %v96_v45 = vrot.slane %v95_v44, 2 }
 0x1e1   : > { %v97_v46 = vadd.f32 %v96_v45, %v95_v44 }
 0x1e3   : > { %v98_v47 = vrot.slane %v97_v46, 1 }
 0x1e5   : > { %v99_v48 = vadd.f32 %v98_v47, %v97_v46 }
 0x1e7   : > { %v100_v49 = vsub.f32 %v630_v1, %v99_v48 }
 0x1e9   : > { %v101_v50 = vmul.f32 %v100_v49, %v100_v49 }
 0x1eb   : > { %v102_v52 = vmul.f32 0.5, %v101_v50 }
 0x1ed   : > { %v104_v53 = vmin.f32 %v102_v52, %v103_v51 }
 0x1ef   : > { %v105_v54 = vsel %vm65_vm1, %v104_v53, 0.0 }
 0x1f0   : > { %106 = vadd.xlane.f32.xlu1 %v105_v54 }
 0x27d   : > { %v107_v55 = vpop.xlane.xlu1 %106 }
 0x27e   : > { %v108_v56 = vmul.f32 0.025600983, %v107_v55 }
 0x280   : > { %v109_v57 = vmul.f32 1.809025, %v108_v56  ;;  %v142_v20 = vmul.f32 0.9045125, %v108_v56 }
 0x282   : > { %518 = vrsqrt.f32 %v109_v57  ;;  %vm112_vm4 = vcmp.eq.f32.partialorder %v109_v57, inf  ;;  %v115_v60 = vand.u32 2147483648, %v109_v57  ;;  %vm114_vm5 = vcmp.eq.f32.partialorder %v109_v57, 0.0 }
 0x28c   : > { %v519_v58 = vpop.eup %518 }
 0x28d   : > { %v111_v59 = vmul.f32 %v519_v58, %v109_v57 }
 0x28f   : > { %v113_v61 = vsel %vm112_vm4, %v109_v57, %v111_v59 }
 0x290   : > { %v116_v62 = vsel %vm114_vm5, %v115_v60, %v113_v61 }
 0x291   : > { %v117_v63 = vsub.f32 0.0, %v116_v62 }
 0x293   : > { %v118_v0 = vmax.f32 %v100_v49, %v117_v63 }
 0x295   : > { %v119_v4 = vmin.f32 %v118_v0, %v116_v62 }
 0x297   : > { %v124_v5 = vrot.slane %v119_v4, %v654_v34 }
 0x299   : > { %v126_v6 = vmul.f32 %v124_v5, %v637_v3 }
 0x29b   : > { %v127_v7 = vsel %vm47_vm0, %v126_v6, 0.0 }
 0x29c   : > { %128 = vadd.xlane.f32.xlu1 %v127_v7 }
 0x329   : > { %v129_v8 = vpop.xlane.xlu1 %128 }
 0x32a   : > { %v130_v9 = vadd.f32 %v129_v8, %v91_v40 }
 0x32c   : > { %v131_v10 = vmul.f32 %v130_v9, %v632_v2 }
 0x32e   : > { %v132_v11 = vsel %vm47_vm0, %v131_v10, 0.0 }
 0x32f   : > { %v133_v12 = vrot.slane %v132_v11, 4 }
 0x331   : > { %v134_v13 = vadd.f32 %v133_v12, %v132_v11 }
 0x333   : > { %v135_v14 = vrot.slane %v134_v13, 2 }
 0x335   : > { %v136_v15 = vadd.f32 %v135_v14, %v134_v13 }
 0x337   : > { %v137_v16 = vrot.slane %v136_v15, 1 }
 0x339   : > { %v138_v17 = vadd.f32 %v137_v16, %v136_v15 }
 0x33b   : > { %v139_v18 = vsub.f32 %v630_v1, %v138_v17 }
 0x33d   : > { %v140_v19 = vmul.f32 %v139_v18, %v139_v18 }
 0x33f   : > { %v141_v21 = vmul.f32 0.5, %v140_v19 }
 0x341   : > { %v143_v22 = vmin.f32 %v141_v21, %v142_v20 }
 0x343   : > { %v144_v23 = vsel %vm65_vm1, %v143_v22, 0.0 }
 0x344   : > { %145 = vadd.xlane.f32.xlu1 %v144_v23 }
 0x3d1   : > { %v146_v24 = vpop.xlane.xlu1 %145 }
 0x3d2   : > { %v147_v25 = vmul.f32 0.025600983, %v146_v24 }
 0x3d4   : > { %v148_v26 = vmul.f32 1.809025, %v147_v25  ;;  %v181_v51 = vmul.f32 0.9045125, %v147_v25 }
 0x3d6   : > { %520 = vrsqrt.f32 %v148_v26  ;;  %vm151_vm6 = vcmp.eq.f32.partialorder %v148_v26, inf  ;;  %v154_v29 = vand.u32 2147483648, %v148_v26  ;;  %vm153_vm7 = vcmp.eq.f32.partialorder %v148_v26, 0.0 }
 0x3e0   : > { %v521_v27 = vpop.eup %520 }
 0x3e1   : > { %v150_v28 = vmul.f32 %v521_v27, %v148_v26 }
 0x3e3   : > { %v152_v30 = vsel %vm151_vm6, %v148_v26, %v150_v28 }
 0x3e4   : > { %v155_v31 = vsel %vm153_vm7, %v154_v29, %v152_v30 }
 0x3e5   : > { %v156_v32 = vsub.f32 0.0, %v155_v31 }
 0x3e7   : > { %v157_v33 = vmax.f32 %v139_v18, %v156_v32 }
 0x3e9   : > { %v158_v35 = vmin.f32 %v157_v33, %v155_v31 }
 0x3eb   : > { %v163_v36 = vrot.slane %v158_v35, %v654_v34 }
 0x3ed   : > { %v165_v37 = vmul.f32 %v163_v36, %v637_v3 }
 0x3ef   : > { %v166_v38 = vsel %vm47_vm0, %v165_v37, 0.0 }
 0x3f0   : > { %167 = vadd.xlane.f32.xlu1 %v166_v38 }
 0x47d   : > { %v168_v39 = vpop.xlane.xlu1 %167 }
 0x47e   : > { %v169_v40 = vadd.f32 %v168_v39, %v130_v9 }
 0x480   : > { %v170_v41 = vmul.f32 %v169_v40, %v632_v2 }
 0x482   : > { %v171_v42 = vsel %vm47_vm0, %v170_v41, 0.0 }
 0x483   : > { %v172_v43 = vrot.slane %v171_v42, 4 }
 0x485   : > { %v173_v44 = vadd.f32 %v172_v43, %v171_v42 }
 0x487   : > { %v174_v45 = vrot.slane %v173_v44, 2 }
 0x489   : > { %v175_v46 = vadd.f32 %v174_v45, %v173_v44 }
 0x48b   : > { %v176_v47 = vrot.slane %v175_v46, 1 }
 0x48d   : > { %v177_v48 = vadd.f32 %v176_v47, %v175_v46 }
 0x48f   : > { %v178_v49 = vsub.f32 %v630_v1, %v177_v48 }
 0x491   : > { %v179_v50 = vmul.f32 %v178_v49, %v178_v49 }
 0x493   : > { %v180_v52 = vmul.f32 0.5, %v179_v50 }
 0x495   : > { %v182_v53 = vmin.f32 %v180_v52, %v181_v51 }
 0x497   : > { %v183_v54 = vsel %vm65_vm1, %v182_v53, 0.0 }
 0x498   : > { %184 = vadd.xlane.f32.xlu1 %v183_v54 }
 0x525   : > { %v185_v55 = vpop.xlane.xlu1 %184 }
 0x526   : > { %v186_v56 = vmul.f32 0.025600983, %v185_v55 }
 0x528   : > { %v187_v57 = vmul.f32 1.809025, %v186_v56  ;;  %v220_v20 = vmul.f32 0.9045125, %v186_v56 }
 0x52a   : > { %522 = vrsqrt.f32 %v187_v57  ;;  %vm190_vm8 = vcmp.eq.f32.partialorder %v187_v57, inf  ;;  %v193_v60 = vand.u32 2147483648, %v187_v57  ;;  %vm192_vm9 = vcmp.eq.f32.partialorder %v187_v57, 0.0 }
 0x534   : > { %v523_v58 = vpop.eup %522 }
 0x535   : > { %v189_v59 = vmul.f32 %v523_v58, %v187_v57 }
 0x537   : > { %v191_v61 = vsel %vm190_vm8, %v187_v57, %v189_v59 }
 0x538   : > { %v194_v62 = vsel %vm192_vm9, %v193_v60, %v191_v61 }
 0x539   : > { %v195_v63 = vsub.f32 0.0, %v194_v62 }
 0x53b   : > { %v196_v0 = vmax.f32 %v178_v49, %v195_v63 }
 0x53d   : > { %v197_v4 = vmin.f32 %v196_v0, %v194_v62 }
 0x53f   : > { %v202_v5 = vrot.slane %v197_v4, %v654_v34 }
 0x541   : > { %v204_v6 = vmul.f32 %v202_v5, %v637_v3 }
 0x543   : > { %v205_v7 = vsel %vm47_vm0, %v204_v6, 0.0 }
 0x544   : > { %206 = vadd.xlane.f32.xlu1 %v205_v7 }
 0x5d1   : > { %v207_v8 = vpop.xlane.xlu1 %206 }
 0x5d2   : > { %v208_v9 = vadd.f32 %v207_v8, %v169_v40 }
 0x5d4   : > { %v209_v10 = vmul.f32 %v208_v9, %v632_v2 }
 0x5d6   : > { %v210_v11 = vsel %vm47_vm0, %v209_v10, 0.0 }
 0x5d7   : > { %v211_v12 = vrot.slane %v210_v11, 4 }
 0x5d9   : > { %v212_v13 = vadd.f32 %v211_v12, %v210_v11 }
 0x5db   : > { %v213_v14 = vrot.slane %v212_v13, 2 }
 0x5dd   : > { %v214_v15 = vadd.f32 %v213_v14, %v212_v13 }
 0x5df   : > { %v215_v16 = vrot.slane %v214_v15, 1 }
 0x5e1   : > { %v216_v17 = vadd.f32 %v215_v16, %v214_v15 }
 0x5e3   : > { %v217_v18 = vsub.f32 %v630_v1, %v216_v17 }
 0x5e5   : > { %v218_v19 = vmul.f32 %v217_v18, %v217_v18 }
 0x5e7   : > { %v219_v21 = vmul.f32 0.5, %v218_v19 }
 0x5e9   : > { %v221_v22 = vmin.f32 %v219_v21, %v220_v20 }
 0x5eb   : > { %v222_v23 = vsel %vm65_vm1, %v221_v22, 0.0 }
 0x5ec   : > { %223 = vadd.xlane.f32.xlu1 %v222_v23 }
 0x679   : > { %v224_v24 = vpop.xlane.xlu1 %223 }
 0x67a   : > { %v225_v25 = vmul.f32 0.025600983, %v224_v24 }
 0x67c   : > { %v226_v26 = vmul.f32 1.809025, %v225_v25  ;;  %v259_v51 = vmul.f32 0.9045125, %v225_v25 }
 0x67e   : > { %524 = vrsqrt.f32 %v226_v26  ;;  %vm229_vm10 = vcmp.eq.f32.partialorder %v226_v26, inf  ;;  %v232_v29 = vand.u32 2147483648, %v226_v26  ;;  %vm231_vm11 = vcmp.eq.f32.partialorder %v226_v26, 0.0 }
 0x688   : > { %v525_v27 = vpop.eup %524 }
 0x689   : > { %v228_v28 = vmul.f32 %v525_v27, %v226_v26 }
 0x68b   : > { %v230_v30 = vsel %vm229_vm10, %v226_v26, %v228_v28 }
 0x68c   : > { %v233_v31 = vsel %vm231_vm11, %v232_v29, %v230_v30 }
 0x68d   : > { %v234_v32 = vsub.f32 0.0, %v233_v31 }
 0x68f   : > { %v235_v33 = vmax.f32 %v217_v18, %v234_v32 }
 0x691   : > { %v236_v35 = vmin.f32 %v235_v33, %v233_v31 }
 0x693   : > { %v241_v36 = vrot.slane %v236_v35, %v654_v34 }
 0x695   : > { %v243_v37 = vmul.f32 %v241_v36, %v637_v3 }
 0x697   : > { %v244_v38 = vsel %vm47_vm0, %v243_v37, 0.0 }
 0x698   : > { %245 = vadd.xlane.f32.xlu1 %v244_v38 }
 0x725   : > { %v246_v39 = vpop.xlane.xlu1 %245 }
 0x726   : > { %v247_v40 = vadd.f32 %v246_v39, %v208_v9 }
 0x728   : > { %v248_v41 = vmul.f32 %v247_v40, %v632_v2 }
 0x72a   : > { %v249_v42 = vsel %vm47_vm0, %v248_v41, 0.0 }
 0x72b   : > { %v250_v43 = vrot.slane %v249_v42, 4 }
 0x72d   : > { %v251_v44 = vadd.f32 %v250_v43, %v249_v42 }
 0x72f   : > { %v252_v45 = vrot.slane %v251_v44, 2 }
 0x731   : > { %v253_v46 = vadd.f32 %v252_v45, %v251_v44 }
 0x733   : > { %v254_v47 = vrot.slane %v253_v46, 1 }
 0x735   : > { %v255_v48 = vadd.f32 %v254_v47, %v253_v46 }
 0x737   : > { %v256_v49 = vsub.f32 %v630_v1, %v255_v48 }
 0x739   : > { %v257_v50 = vmul.f32 %v256_v49, %v256_v49 }
 0x73b   : > { %v258_v52 = vmul.f32 0.5, %v257_v50 }
 0x73d   : > { %v260_v53 = vmin.f32 %v258_v52, %v259_v51 }
 0x73f   : > { %v261_v54 = vsel %vm65_vm1, %v260_v53, 0.0 }
 0x740   : > { %262 = vadd.xlane.f32.xlu0 %v261_v54 }
 0x7cd   : > { %v263_v55 = vpop.xlane.xlu0 %262 }
 0x7ce   : > { %v264_v56 = vmul.f32 0.025600983, %v263_v55 }
 0x7d0   : > { %v265_v57 = vmul.f32 1.809025, %v264_v56  ;;  %v298_v20 = vmul.f32 0.9045125, %v264_v56 }
 0x7d2   : > { %526 = vrsqrt.f32 %v265_v57  ;;  %vm268_vm12 = vcmp.eq.f32.partialorder %v265_v57, inf  ;;  %v271_v60 = vand.u32 2147483648, %v265_v57  ;;  %vm270_vm13 = vcmp.eq.f32.partialorder %v265_v57, 0.0 }
 0x7dc   : > { %v527_v58 = vpop.eup %526 }
 0x7dd   : > { %v267_v59 = vmul.f32 %v527_v58, %v265_v57 }
 0x7df   : > { %v269_v61 = vsel %vm268_vm12, %v265_v57, %v267_v59 }
 0x7e0   : > { %v272_v62 = vsel %vm270_vm13, %v271_v60, %v269_v61 }
 0x7e1   : > { %v273_v63 = vsub.f32 0.0, %v272_v62 }
 0x7e3   : > { %v274_v0 = vmax.f32 %v256_v49, %v273_v63 }
 0x7e5   : > { %v275_v4 = vmin.f32 %v274_v0, %v272_v62 }
 0x7e7   : > { %v280_v5 = vrot.slane %v275_v4, %v654_v34 }
 0x7e9   : > { %v282_v6 = vmul.f32 %v280_v5, %v637_v3 }
 0x7eb   : > { %v283_v7 = vsel %vm47_vm0, %v282_v6, 0.0 }
 0x7ec   : > { %284 = vadd.xlane.f32.xlu1 %v283_v7 }
 0x879   : > { %v285_v8 = vpop.xlane.xlu1 %284 }
 0x87a   : > { %v286_v9 = vadd.f32 %v285_v8, %v247_v40 }
 0x87c   : > { %v287_v10 = vmul.f32 %v286_v9, %v632_v2 }
 0x87e   : > { %v288_v11 = vsel %vm47_vm0, %v287_v10, 0.0 }
 0x87f   : > { %v289_v12 = vrot.slane %v288_v11, 4 }
 0x881   : > { %v290_v13 = vadd.f32 %v289_v12, %v288_v11 }
 0x883   : > { %v291_v14 = vrot.slane %v290_v13, 2 }
 0x885   : > { %v292_v15 = vadd.f32 %v291_v14, %v290_v13 }
 0x887   : > { %v293_v16 = vrot.slane %v292_v15, 1 }
 0x889   : > { %v294_v17 = vadd.f32 %v293_v16, %v292_v15 }
 0x88b   : > { %v295_v18 = vsub.f32 %v630_v1, %v294_v17 }
 0x88d   : > { %v296_v19 = vmul.f32 %v295_v18, %v295_v18 }
 0x88f   : > { %v297_v21 = vmul.f32 0.5, %v296_v19 }
 0x891   : > { %v299_v22 = vmin.f32 %v297_v21, %v298_v20 }
 0x893   : > { %v300_v23 = vsel %vm65_vm1, %v299_v22, 0.0 }
 0x894   : > { %301 = vadd.xlane.f32.xlu0 %v300_v23 }
 0x921   : > { %v302_v24 = vpop.xlane.xlu0 %301 }
 0x922   : > { %v303_v25 = vmul.f32 0.025600983, %v302_v24 }
 0x924   : > { %v304_v26 = vmul.f32 1.809025, %v303_v25  ;;  %v337_v51 = vmul.f32 0.9045125, %v303_v25 }
 0x926   : > { %528 = vrsqrt.f32 %v304_v26  ;;  %vm307_vm14 = vcmp.eq.f32.partialorder %v304_v26, inf  ;;  %v310_v29 = vand.u32 2147483648, %v304_v26  ;;  %vm309_vm15 = vcmp.eq.f32.partialorder %v304_v26, 0.0 }
 0x930   : > { %v529_v27 = vpop.eup %528 }
 0x931   : > { %v306_v28 = vmul.f32 %v529_v27, %v304_v26 }
 0x933   : > { %v308_v30 = vsel %vm307_vm14, %v304_v26, %v306_v28 }
 0x934   : > { %v311_v31 = vsel %vm309_vm15, %v310_v29, %v308_v30 }
 0x935   : > { %v312_v32 = vsub.f32 0.0, %v311_v31 }
 0x937   : > { %v313_v33 = vmax.f32 %v295_v18, %v312_v32 }
 0x939   : > { %v314_v35 = vmin.f32 %v313_v33, %v311_v31 }
 0x93b   : > { %v319_v36 = vrot.slane %v314_v35, %v654_v34 }
 0x93d   : > { %v321_v37 = vmul.f32 %v319_v36, %v637_v3 }
 0x93f   : > { %v322_v38 = vsel %vm47_vm0, %v321_v37, 0.0 }
 0x940   : > { %323 = vadd.xlane.f32.xlu1 %v322_v38 }
 0x9cd   : > { %v324_v39 = vpop.xlane.xlu1 %323 }
 0x9ce   : > { %v325_v40 = vadd.f32 %v324_v39, %v286_v9 }
 0x9d0   : > { %v326_v41 = vmul.f32 %v325_v40, %v632_v2 }
 0x9d2   : > { %v327_v42 = vsel %vm47_vm0, %v326_v41, 0.0 }
 0x9d3   : > { %v328_v43 = vrot.slane %v327_v42, 4 }
 0x9d5   : > { %v329_v44 = vadd.f32 %v328_v43, %v327_v42 }
 0x9d7   : > { %v330_v45 = vrot.slane %v329_v44, 2 }
 0x9d9   : > { %v331_v46 = vadd.f32 %v330_v45, %v329_v44 }
 0x9db   : > { %v332_v47 = vrot.slane %v331_v46, 1 }
 0x9dd   : > { %v333_v48 = vadd.f32 %v332_v47, %v331_v46 }
 0x9df   : > { %v334_v49 = vsub.f32 %v630_v1, %v333_v48 }
 0x9e1   : > { %v335_v50 = vmul.f32 %v334_v49, %v334_v49 }
 0x9e3   : > { %v336_v52 = vmul.f32 0.5, %v335_v50 }
 0x9e5   : > { %v338_v53 = vmin.f32 %v336_v52, %v337_v51 }
 0x9e7   : > { %v339_v54 = vsel %vm65_vm1, %v338_v53, 0.0 }
 0x9e8   : > { %340 = vadd.xlane.f32.xlu0 %v339_v54 }
 0xa75   : > { %v341_v55 = vpop.xlane.xlu0 %340 }
 0xa76   : > { %v342_v56 = vmul.f32 0.025600983, %v341_v55 }
 0xa78   : > { %v343_v57 = vmul.f32 1.809025, %v342_v56  ;;  %v376_v20 = vmul.f32 0.9045125, %v342_v56 }
 0xa7a   : > { %530 = vrsqrt.f32 %v343_v57  ;;  %vm346_vm2 = vcmp.eq.f32.partialorder %v343_v57, inf  ;;  %v349_v60 = vand.u32 2147483648, %v343_v57  ;;  %vm348_vm3 = vcmp.eq.f32.partialorder %v343_v57, 0.0 }
 0xa84   : > { %v531_v58 = vpop.eup %530 }
 0xa85   : > { %v345_v59 = vmul.f32 %v531_v58, %v343_v57 }
 0xa87   : > { %v347_v61 = vsel %vm346_vm2, %v343_v57, %v345_v59 }
 0xa88   : > { %v350_v62 = vsel %vm348_vm3, %v349_v60, %v347_v61 }
 0xa89   : > { %v351_v63 = vsub.f32 0.0, %v350_v62 }
 0xa8b   : > { %v352_v0 = vmax.f32 %v334_v49, %v351_v63 }
 0xa8d   : > { %v353_v4 = vmin.f32 %v352_v0, %v350_v62 }
 0xa8f   : > { %v358_v5 = vrot.slane %v353_v4, %v654_v34 }
 0xa91   : > { %v360_v6 = vmul.f32 %v358_v5, %v637_v3 }
 0xa93   : > { %v361_v7 = vsel %vm47_vm0, %v360_v6, 0.0 }
 0xa94   : > { %362 = vadd.xlane.f32.xlu1 %v361_v7 }
 0xb21   : > { %v363_v8 = vpop.xlane.xlu1 %362 }
 0xb22   : > { %v364_v9 = vadd.f32 %v363_v8, %v325_v40 }
 0xb24   : > { %v365_v10 = vmul.f32 %v364_v9, %v632_v2 }
 0xb26   : > { %v366_v11 = vsel %vm47_vm0, %v365_v10, 0.0 }
 0xb27   : > { %v367_v12 = vrot.slane %v366_v11, 4 }
 0xb29   : > { %v368_v13 = vadd.f32 %v367_v12, %v366_v11 }
 0xb2b   : > { %v369_v14 = vrot.slane %v368_v13, 2 }
 0xb2d   : > { %v370_v15 = vadd.f32 %v369_v14, %v368_v13 }
 0xb2f   : > { %v371_v16 = vrot.slane %v370_v15, 1 }
 0xb31   : > { %v372_v17 = vadd.f32 %v371_v16, %v370_v15 }
 0xb33   : > { %v373_v18 = vsub.f32 %v630_v1, %v372_v17 }
 0xb35   : > { %v374_v19 = vmul.f32 %v373_v18, %v373_v18 }
 0xb37   : > { %v375_v21 = vmul.f32 0.5, %v374_v19 }
 0xb39   : > { %v377_v22 = vmin.f32 %v375_v21, %v376_v20 }
 0xb3b   : > { %v378_v23 = vsel %vm65_vm1, %v377_v22, 0.0 }
 0xb3c   : > { %379 = vadd.xlane.f32.xlu0 %v378_v23 }
 0xbc9   : > { %v380_v24 = vpop.xlane.xlu0 %379 }
 0xbca   : > { %v381_v25 = vmul.f32 0.025600983, %v380_v24  ;;  %v586_v24 = vmov 0.0  }
 0xbcc   : > { %v382_v26 = vmul.f32 1.809025, %v381_v25  ;;  %v415_v51 = vmul.f32 0.9045125, %v381_v25 }
 0xbce   : > { %532 = vrsqrt.f32 %v382_v26  ;;  %vm385_vm4 = vcmp.eq.f32.partialorder %v382_v26, inf  ;;  %v388_v29 = vand.u32 2147483648, %v382_v26  ;;  %vm387_vm5 = vcmp.eq.f32.partialorder %v382_v26, 0.0 }
 0xbd8   : > { %v533_v27 = vpop.eup %532 }
 0xbd9   : > { %v384_v28 = vmul.f32 %v533_v27, %v382_v26 }
 0xbdb   : > { %v386_v30 = vsel %vm385_vm4, %v382_v26, %v384_v28 }
 0xbdc   : > { %v389_v31 = vsel %vm387_vm5, %v388_v29, %v386_v30 }
 0xbdd   : > { %v390_v32 = vsub.f32 0.0, %v389_v31 }
 0xbdf   : > { %v391_v33 = vmax.f32 %v373_v18, %v390_v32 }
 0xbe1   : > { %v392_v35 = vmin.f32 %v391_v33, %v389_v31 }
 0xbe3   : > { %v397_v36 = vrot.slane %v392_v35, %v654_v34 }
 0xbe5   : > { %v399_v37 = vmul.f32 %v397_v36, %v637_v3 }
 0xbe7   : > { %v400_v38 = vsel %vm47_vm0, %v399_v37, 0.0 }
 0xbe8   : > { %401 = vadd.xlane.f32.xlu1 %v400_v38 }
 0xc75   : > { %v402_v39 = vpop.xlane.xlu1 %401 }
 0xc76   : > { %v403_v40 = vadd.f32 %v402_v39, %v364_v9 }
 0xc78   : > { %v404_v41 = vmul.f32 %v403_v40, %v632_v2  ;;  %v450_v8 = vmul.f32 %v403_v40, %v403_v40 }
 0xc7a   : > { %v405_v42 = vsel %vm47_vm0, %v404_v41, 0.0  ;;  %v451_v9 = vrot.slane %v450_v8, 4 }
 0xc7b   : > { %v406_v43 = vrot.slane %v405_v42, 4 }
 0xc7c   : > { %v452_v10 = vadd.f32 %v451_v9, %v450_v8 }
 0xc7d   : > { %v407_v44 = vadd.f32 %v406_v43, %v405_v42 }
 0xc7e   : > { %v453_v11 = vrot.slane %v452_v10, 2 }
 0xc7f   : > { %v408_v45 = vrot.slane %v407_v44, 2 }
 0xc80   : > { %v454_v15 = vadd.f32 %v453_v11, %v452_v10 }
 0xc81   : > { %v409_v46 = vadd.f32 %v408_v45, %v407_v44 }
 0xc82   : > { %v455_v18 = vrot.slane %v454_v15, 1 }
 0xc83   : > { %v410_v47 = vrot.slane %v409_v46, 1 }
 0xc85   : > { %v411_v48 = vadd.f32 %v410_v47, %v409_v46 }
 0xc87   : > { %v412_v49 = vsub.f32 %v630_v1, %v411_v48 }
 0xc89   : > { %v413_v50 = vmul.f32 %v412_v49, %v412_v49 }
 0xc8b   : > { %v414_v52 = vmul.f32 0.5, %v413_v50 }
 0xc8d   : > { %v416_v53 = vmin.f32 %v414_v52, %v415_v51 }
 0xc8f   : > { %v417_v54 = vsel %vm65_vm1, %v416_v53, 0.0 }
 0xc90   : > { %418 = vadd.xlane.f32.xlu0 %v417_v54 }
 0xd1d   : > { %v419_v55 = vpop.xlane.xlu0 %418 }
 0xd1e   : > { %v420_v4 = vmul.f32 0.025600983, %v419_v55  }
 0xd20   : > { %v421_v56 = vmul.f32 1.809025, %v420_v4 }
 0xd22   : > { %534 = vrsqrt.f32 %v421_v56  ;;  %vm424_vm6 = vcmp.eq.f32.partialorder %v421_v56, inf  ;;  %v427_v59 = vand.u32 2147483648, %v421_v56  ;;  %vm426_vm7 = vcmp.eq.f32.partialorder %v421_v56, 0.0 }
 0xd2c   : > { %v535_v57 = vpop.eup %534 }
 0xd2d   : > { %v423_v58 = vmul.f32 %v535_v57, %v421_v56 }
 0xd2f   : > { %v425_v60 = vsel %vm424_vm6, %v421_v56, %v423_v58 }
 0xd30   : > { %v428_v61 = vsel %vm426_vm7, %v427_v59, %v425_v60 }
 0xd31   : > { %v429_v62 = vsub.f32 0.0, %v428_v61 }
 0xd33   : > { %v430_v63 = vmax.f32 %v412_v49, %v429_v62 }
 0xd35   : > { %v431_v0 = vmin.f32 %v430_v63, %v428_v61 }
 0xd37   : > { %v436_v5 = vrot.slane %v431_v0, %v654_v34  ;;  %v456_v34 = vadd.f32 %v455_v18, %v454_v15 }
 0xd39   : > { %v438_v6 = vmul.f32 %v436_v5, %v637_v3  ;;  %v457_v23 = vmul.f32 1e-10, %v456_v34 }
 0xd3b   : > { %v439_v7 = vsel %vm47_vm0, %v438_v6, 0.0 }
 0xd3c   : > { %440 = vadd.xlane.f32.xlu1 %v439_v7 }
 0xdc9   : > { %v441_v12 = vpop.xlane.xlu1 %440 }
 0xdca   : > { %v442_v13 = vadd.f32 %v441_v12, %v403_v40   ;;  %v443_v14 = vmul.f32 %v441_v12, %v441_v12 }
 0xdcc   : > { %v444_v16 = vrot.slane %v443_v14, 4  ;;  %v737_v5 = vmov %v442_v13 }
 0xdce   : > { %v445_v17 = vadd.f32 %v444_v16, %v443_v14 }
 0xdd0   : > { %v446_v19 = vrot.slane %v445_v17, 2 }
 0xdd2   : > { %v447_v20 = vadd.f32 %v446_v19, %v445_v17 }
 0xdd4   : > { %v448_v21 = vrot.slane %v447_v20, 1 }
 0xdd6   : > { %v449_v22 = vadd.f32 %v448_v21, %v447_v20 }
 0xdd8   : > { %vm458_vm0 = vcmp.lt.f32.partialorder %v449_v22, %v457_v23 }
 0xdd9   : > { %v485_v25 = vsel %vm458_vm0, 1.0, %v586_v24 }
 0xdda   : > { %486 = vpush %v485_v25 }
 0xe0b   : > { %s487_s0 = spop %486 }
 0xe0c   : > { %p41_p9 = scmp.lt.f32.partialorder %s487_s0, 0.5 }
 0xe0e   : > { %p42_p10 = pnand %p41_p9, %p40_p8 }
 0xe0f   :  { %vm464_vm1 = vcmask (%p42_p10), 7168  }
 0xe10   :  { %45 = sbr.rel (!%p42_p10) target bundleno = 23 (0x17), region = 47  ;;  %465 = vst.msk [vmem:[%s736_s4] sm:$0xff] (%p42_p10), %vm464_vm1, %v442_v13 }
 0xe17   :  { %470 = vsyncpa [#allocation4], 1 }

</bundles_post_ra>
